<compile_context>
chip_gen: v5e
topology: v5e:2x2
jax: 0.10.0
libtpu: 0.0.40
codegen_flags: <defaults>
</compile_context>

<pallas_src>
import jax
import jax.numpy as jnp
from jax import lax
from jax.experimental import pallas as pl
from jax.experimental.pallas import tpu as pltpu


def _vmem_capacity_bytes(default=64 * 2**20):
    """Physical VMEM of the local TPU, with a conservative fallback."""
    try:
        info = pltpu.get_tpu_info()
        return int(getattr(info, "vmem_capacity_bytes", default))
    except Exception:
        return default


# ---------------------------------------------------------------------------
# Forward pass (single fused Pallas kernel + thin wrapper)
# ---------------------------------------------------------------------------
def mhsa_forward(x, params, heads):
    """x: (B, C, W, H) float32, NCHW as in PyTorch."""
    B, C, W, H = x.shape
    N = W * H
    d = C // heads
    d3 = 3 * d

    # ---- wrapper-side layout prep (parameter-sized, one-time) --------------
    # x: NCHW -> (B, N, C); bf16 cast fused with the transpose.
    x_flat = x.reshape(B, C, N).transpose(0, 2, 1).astype(jnp.bfloat16)

    # Per-head packed projection weight, column order [k_h | q_h | v_h] so the
    # energy rhs ([k | q]) is a zero-copy slice of the projection output.
    def _per_head_cols(w):            # w: (C_out, C_in) conv1x1 weight
        return w.T.reshape(C, heads, d).transpose(1, 0, 2)       # (heads, C, d)

    w_packed = jnp.concatenate(
        [_per_head_cols(params["wk"]),
         _per_head_cols(params["wq"]),
         _per_head_cols(params["wv"])], axis=2).astype(jnp.bfloat16)   # (heads, C, 3d)

    b_packed = jnp.concatenate(
        [params["bk"].reshape(heads, 1, d),
         params["bq"].reshape(heads, 1, d),
         params["bv"].reshape(heads, 1, d)], axis=2).astype(jnp.float32)  # (heads, 1, 3d)

    # relative position term: (1, heads, d, W, H) -> (heads, N, d), bf16
    pos = (params["rel_h"] + params["rel_w"]).reshape(heads, d, N)
    pos = pos.transpose(0, 2, 1).astype(jnp.bfloat16)            # (heads, N, d)

    # ---- fused projection + attention: one (batch, head) per grid step -----
    def kernel(x_ref, w_ref, b_ref, pos_ref, o_ref):
        xb = x_ref[0]                                            # (N, C)  bf16
        wh = w_ref[0]                                            # (C, 3d) bf16

        # per-head q/k/v projection: one MXU matmul, f32 accumulation
        y = jnp.dot(xb, wh, preferred_element_type=jnp.float32)  # (N, 3d) f32
        y = (y + b_ref[0]).astype(jnp.bfloat16)                  # (N, 3d) bf16

        kq = y[:, :2 * d]                                        # rhs = [k | q]
        q = y[:, d:2 * d]                                        # (N, d)
        v = y[:, 2 * d:]                                         # (N, d)

        # energy[n, m] = sum_j q[n,j] k[m,j] + sum_j pos[n,j] q[m,j]
        # single MXU op: [q | pos] contracted with [k | q] over 2d.
        # (No 1/sqrt(d) scaling -- matches the PyTorch module.)
        lhs = jnp.concatenate([q, pos_ref[0]], axis=-1)          # (N, 2d) bf16
        energy = lax.dot_general(
            lhs, kq, (((1,), (1,)), ((), ())),
            preferred_element_type=jnp.float32)                  # (N, N) f32

        # numerically stable softmax (f32); normalization deferred past the
        # PV matmul so it is an (N, d) pass instead of an (N, N) pass.
        m = jnp.max(energy, axis=-1, keepdims=True)
        p = jnp.exp(energy - m)                                  # (N, N) f32
        s = jnp.sum(p, axis=-1, keepdims=True)                   # (N, 1) f32

        pv = jnp.dot(p.astype(jnp.bfloat16), v,
                     preferred_element_type=jnp.float32)         # (N, d) f32
        o_ref[0, 0] = (pv * pl.reciprocal(s, approx=True)).astype(o_ref.dtype)

    # Per-step VMEM working set: double-buffered pipeline blocks + per-head
    # softmax intermediates (liveness is bounded to one head by the grid).
    need = (2 * (N * C * 2 + C * d3 * 2 + d3 * 4 + N * d * 2 + N * d * 4)
            + 3 * N * N * 4          # energy + exp (f32)
            + N * N * 2              # p cast to bf16 for the PV matmul
            + 2 * N * d3 * 4         # projection intermediates
            + (4 << 20))             # slack for Mosaic internal scratch
    cap = _vmem_capacity_bytes() - (8 << 20)   # headroom below physical VMEM
    vmem_limit = int(max(32 << 20, min(need, cap)))

    out = pl.pallas_call(
        kernel,
        out_shape=jax.ShapeDtypeStruct((B, heads, N, d), jnp.float32),
        grid_spec=pltpu.PrefetchScalarGridSpec(
            num_scalar_prefetch=0,
            grid=(B, heads),
            in_specs=[
                pl.BlockSpec((1, N, C), lambda b, h: (b, 0, 0)),   # x row (reused over heads)
                pl.BlockSpec((1, C, d3), lambda b, h: (h, 0, 0)),  # per-head weight
                pl.BlockSpec((1, 1, d3), lambda b, h: (h, 0, 0)),  # per-head bias
                pl.BlockSpec((1, N, d), lambda b, h: (h, 0, 0)),   # per-head pos
            ],
            out_specs=pl.BlockSpec((1, 1, N, d), lambda b, h: (b, h, 0, 0)),
        ),
        compiler_params=pltpu.CompilerParams(
            dimension_semantics=("parallel", "parallel"),
            vmem_limit_bytes=vmem_limit),
    )(x_flat, w_packed, b_packed, pos)

    # (B, heads, N, d) -> (B, heads, d, N) -> NCHW; single cheap transpose.
    return out.transpose(0, 1, 3, 2).reshape(B, C, W, H)


# ---------------------------------------------------------------------------
# Pure-JAX reference (mirrors the PyTorch forward exactly) for verification
# ---------------------------------------------------------------------------
def mhsa_reference(x, params, heads):
    B, C, W, H = x.shape
    N = W * H
    d = C // heads

    def conv1x1(xin, w, b):
        return jnp.einsum("bcwh,oc->bowh", xin, w) + b[None, :, None, None]

    q = conv1x1(x, params["wq"], params["bq"]).reshape(B, heads, d, N)
    k = conv1x1(x, params["wk"], params["bk"]).reshape(B, heads, d, N)
    v = conv1x1(x, params["wv"], params["bv"]).reshape(B, heads, d, N)

    cc = jnp.einsum("bhdn,bhdm->bhnm", q, k)
    pos = (params["rel_h"] + params["rel_w"]).reshape(1, heads, d, N)
    pos = pos.transpose(0, 1, 3, 2)                                  # (1,h,N,d)
    cp = jnp.einsum("xhnd,bhdm->bhnm", pos, q)
    energy = cc + cp
    attn = jax.nn.softmax(energy, axis=-1)
    out = jnp.einsum("bhdm,bhnm->bhdn", v, attn)
    return out.reshape(B, C, W, H)


# ---------------------------------------------------------------------------
if __name__ == "__main__":
    # small shapes consistent with the module: n_dims=C=16, heads=4, W=H=8
    # NOTE: tune/benchmark at production BoT shapes (C>=512, d=128, N>=1024);
    # at this toy shape everything pads to the (8/16,128) vreg tile.
    B, C, W, H, heads = 2, 16, 8, 8, 4
    d = C // heads

    key = jax.random.PRNGKey(0)
    ks = jax.random.split(key, 9)

    params = {
        "wq": jax.random.normal(ks[0], (C, C), jnp.float32) * 0.1,
        "bq": jax.random.normal(ks[1], (C,), jnp.float32) * 0.1,
        "wk": jax.random.normal(ks[2], (C, C), jnp.float32) * 0.1,
        "bk": jax.random.normal(ks[3], (C,), jnp.float32) * 0.1,
        "wv": jax.random.normal(ks[4], (C, C), jnp.float32) * 0.1,
        "bv": jax.random.normal(ks[5], (C,), jnp.float32) * 0.1,
        "rel_h": jax.random.normal(ks[6], (1, heads, d, 1, H), jnp.float32),
        "rel_w": jax.random.normal(ks[7], (1, heads, d, W, 1), jnp.float32),
    }

    x = jax.random.normal(ks[8], (B, C, W, H), jnp.float32)

    out = mhsa_forward(x, params, heads)
    out = jax.block_until_ready(out)

    ref = mhsa_reference(x, params, heads)
    assert out.shape == (B, C, W, H)
    # bf16 MXU operands + approx reciprocal -> relaxed tolerance vs. f32 ref
    assert jnp.allclose(out, ref, atol=5e-2, rtol=5e-2), (
        f"max abs diff {jnp.max(jnp.abs(out - ref))}")

    print("KERNEL_OK")
</pallas_src>

<mosaic_0001>
module attributes {stable_mosaic.version = 11 : i64} {
  func.func @kernel(%arg0: i32, %arg1: i32, %arg2: memref<1x64x16xbf16, #tpu.memory_space<vmem>>, %arg3: memref<1x16x12xbf16, #tpu.memory_space<vmem>>, %arg4: memref<1x1x12xf32, #tpu.memory_space<vmem>>, %arg5: memref<1x64x4xbf16, #tpu.memory_space<vmem>>, %arg6: memref<1x1x64x4xf32, #tpu.memory_space<vmem>>) attributes {dimension_semantics = [#tpu.dimension_semantics<parallel>, #tpu.dimension_semantics<parallel>], iteration_bounds = array<i64: 2, 4>, scalar_prefetch = 0 : i64, scratch_operands = 0 : i64, tpu.core_type = #tpu.core_type<tc>, window_params = [{transform_indices = @transform_0, window_bounds = array<i64: 1, 64, 16>}, {transform_indices = @transform_1, window_bounds = array<i64: 1, 16, 12>}, {transform_indices = @transform_2, window_bounds = array<i64: 1, 1, 12>}, {transform_indices = @transform_3, window_bounds = array<i64: 1, 64, 4>}, {transform_indices = @transform_4, window_bounds = array<i64: 1, 1, 64, 4>}]} {
    %c0 = arith.constant 0 : index
    %c0_0 = arith.constant 0 : index
    %c0_1 = arith.constant 0 : index
    %0 = vector.load %arg2[%c0, %c0_0, %c0_1] : memref<1x64x16xbf16, #tpu.memory_space<vmem>>, vector<1x64x16xbf16>
    %1 = vector.shape_cast %0 : vector<1x64x16xbf16> to vector<64x16xbf16>
    %c0_2 = arith.constant 0 : index
    %c0_3 = arith.constant 0 : index
    %c0_4 = arith.constant 0 : index
    %2 = vector.load %arg3[%c0_2, %c0_3, %c0_4] : memref<1x16x12xbf16, #tpu.memory_space<vmem>>, vector<1x16x12xbf16>
    %3 = vector.shape_cast %2 : vector<1x16x12xbf16> to vector<16x12xbf16>
    %cst = arith.constant dense<0.000000e+00> : vector<64x12xf32>
    %4 = tpu.matmul %1, %3, %cst {dimension_numbers = #tpu.dot_dimension_numbers<[1], [0], [0], [1], [0, 0, 1, 1], [], []>} : vector<64x16xbf16>, vector<16x12xbf16>, vector<64x12xf32> -> vector<64x12xf32>
    %c0_5 = arith.constant 0 : index
    %c0_6 = arith.constant 0 : index
    %c0_7 = arith.constant 0 : index
    %5 = vector.load %arg4[%c0_5, %c0_6, %c0_7] : memref<1x1x12xf32, #tpu.memory_space<vmem>>, vector<1x1x12xf32>
    %6 = vector.shape_cast %5 : vector<1x1x12xf32> to vector<1x12xf32>
    %7 = vector.broadcast %6 : vector<1x12xf32> to vector<64x12xf32>
    %8 = arith.addf %4, %7 : vector<64x12xf32>
    %9 = arith.truncf %8 : vector<64x12xf32> to vector<64x12xbf16>
    %10 = vector.extract_strided_slice %9 {offsets = [0, 0], sizes = [64, 8], strides = [1, 1]} : vector<64x12xbf16> to vector<64x8xbf16>
    %11 = vector.extract_strided_slice %9 {offsets = [0, 4], sizes = [64, 4], strides = [1, 1]} : vector<64x12xbf16> to vector<64x4xbf16>
    %12 = vector.extract_strided_slice %9 {offsets = [0, 8], sizes = [64, 4], strides = [1, 1]} : vector<64x12xbf16> to vector<64x4xbf16>
    %c0_8 = arith.constant 0 : index
    %c0_9 = arith.constant 0 : index
    %c0_10 = arith.constant 0 : index
    %13 = vector.load %arg5[%c0_8, %c0_9, %c0_10] : memref<1x64x4xbf16, #tpu.memory_space<vmem>>, vector<1x64x4xbf16>
    %14 = vector.shape_cast %13 : vector<1x64x4xbf16> to vector<64x4xbf16>
    %15 = tpu.concatenate %11, %14 in 1 : vector<64x4xbf16>, vector<64x4xbf16> -> vector<64x8xbf16>
    %cst_11 = arith.constant dense<0.000000e+00> : vector<64x64xf32>
    %16 = tpu.matmul %15, %10, %cst_11 {dimension_numbers = #tpu.dot_dimension_numbers<[1], [1], [0], [0], [0, 0, 1, 0], [], []>} : vector<64x8xbf16>, vector<64x8xbf16>, vector<64x64xf32> -> vector<64x64xf32>
    %cst_12 = arith.constant dense<0xFF800000> : vector<64xf32>
    %17 = vector.multi_reduction <maximumf>, %16, %cst_12 [1] : vector<64x64xf32> to vector<64xf32>
    %18 = vector.shape_cast %17 : vector<64xf32> to vector<64x1xf32>
    %19 = vector.broadcast %18 : vector<64x1xf32> to vector<64x64xf32>
    %20 = arith.subf %16, %19 : vector<64x64xf32>
    %21 = math.exp %20 : vector<64x64xf32>
    %cst_13 = arith.constant dense<0.000000e+00> : vector<64xf32>
    %22 = vector.multi_reduction <add>, %21, %cst_13 [1] : vector<64x64xf32> to vector<64xf32>
    %23 = vector.shape_cast %22 : vector<64xf32> to vector<64x1xf32>
    %24 = arith.truncf %21 : vector<64x64xf32> to vector<64x64xbf16>
    %cst_14 = arith.constant dense<0.000000e+00> : vector<64x4xf32>
    %25 = tpu.matmul %24, %12, %cst_14 {dimension_numbers = #tpu.dot_dimension_numbers<[1], [0], [0], [1], [0, 0, 1, 1], [], []>} : vector<64x64xbf16>, vector<64x4xbf16>, vector<64x4xf32> -> vector<64x4xf32>
    %26 = tpu.reciprocal %23 {approx = true} : vector<64x1xf32> -> vector<64x1xf32>
    %27 = vector.broadcast %26 : vector<64x1xf32> to vector<64x4xf32>
    %28 = arith.mulf %25, %27 : vector<64x4xf32>
    %c0_15 = arith.constant 0 : index
    %c0_16 = arith.constant 0 : index
    %c0_17 = arith.constant 0 : index
    %c0_18 = arith.constant 0 : index
    %29 = vector.load %arg6[%c0_15, %c0_16, %c0_17, %c0_18] : memref<1x1x64x4xf32, #tpu.memory_space<vmem>>, vector<1x1x64x4xf32>
    %30 = vector.shape_cast %29 : vector<1x1x64x4xf32> to vector<64x4xf32>
    %31 = vector.shape_cast %28 : vector<64x4xf32> to vector<1x1x64x4xf32>
    tpu.vector_store %arg6[%c0_15, %c0_16, %c0_17, %c0_18], %31 {strides = array<i32>} : memref<1x1x64x4xf32, #tpu.memory_space<vmem>>, vector<1x1x64x4xf32>,
    return
  }
  func.func @transform_0(%arg0: i32, %arg1: i32) -> (i32, i32, i32) {
    %c0_i32 = arith.constant 0 : i32
    %c0_i32_0 = arith.constant 0 : i32
    %c0_i32_1 = arith.constant 0 : i32
    return %arg0, %c0_i32, %c0_i32_0 : i32, i32, i32
  }
  func.func @transform_1(%arg0: i32, %arg1: i32) -> (i32, i32, i32) {
    %c0_i32 = arith.constant 0 : i32
    %c0_i32_0 = arith.constant 0 : i32
    %c0_i32_1 = arith.constant 0 : i32
    return %arg1, %c0_i32, %c0_i32_0 : i32, i32, i32
  }
  func.func @transform_2(%arg0: i32, %arg1: i32) -> (i32, i32, i32) {
    %c0_i32 = arith.constant 0 : i32
    %c0_i32_0 = arith.constant 0 : i32
    %c0_i32_1 = arith.constant 0 : i32
    return %arg1, %c0_i32, %c0_i32_0 : i32, i32, i32
  }
  func.func @transform_3(%arg0: i32, %arg1: i32) -> (i32, i32, i32) {
    %c0_i32 = arith.constant 0 : i32
    %c0_i32_0 = arith.constant 0 : i32
    %c0_i32_1 = arith.constant 0 : i32
    return %arg1, %c0_i32, %c0_i32_0 : i32, i32, i32
  }
  func.func @transform_4(%arg0: i32, %arg1: i32) -> (i32, i32, i32, i32) {
    %c0_i32 = arith.constant 0 : i32
    %c0_i32_0 = arith.constant 0 : i32
    %c0_i32_1 = arith.constant 0 : i32
    return %arg0, %arg1, %c0_i32, %c0_i32_0 : i32, i32, i32, i32
  }
}

</mosaic_0001>

<bundles_post_ra>
// kernel: tpu_custom_call.1
= control target key start
LH: loop header
LB: loop body
LE: loop exit
PB: predicated region body
PF: predicated region fallthrough
CT: control target
= control target key end

     0   :  { %s989_s15 = smov 0   ;;  %s991_s16 = smov 0   ;;  %s1111_s0 = inlined_call_operand.vmem [shape: bf16[2,64,16], index: 0, kind: input, shape index: {}]   ;;  %s1112_s1 = inlined_call_operand.vmem [shape: bf16[4,16,12], index: 1, kind: input, shape index: {}]   ;;  %s1113_s2 = inlined_call_operand.vmem [shape: f32[4,1,12], index: 2, kind: input, shape index: {}]   ;;  %s1114_s3 = inlined_call_operand.vmem [shape: bf16[4,64,4], index: 3, kind: input, shape index: {}]   ;;  %s1115_s4 = inlined_call_operand.vmem [shape: f32[2,4,64,4], index: 4, kind: output, shape index: {}]  }
   0x1   :  { %s993_s17 = smov 0   ;;  %s995_s18 = smov 0  }
   0x2   :  { %s997_s19 = smov 0  }
   0x3 LB: > { %s23_s20 = sadd.s32 1, %s951_s17  ;;  %s26_s21 = sadd.s32 1, %s955_s18  ;;  %s959_s19 = sphi %s997_s19, %s14_s19   ;;  %s955_s18 = sphi %s995_s18, %s1119_s18   ;;  %s951_s17 = sphi %s993_s17, %s1118_s17   ;;  %s947_s16 = sphi %s991_s16, %s1117_s16   ;;  %s943_s15 = sphi %s989_s15, %s1116_s15  }
   0x4   : > { %p24_p0 = scmp.ge.s32.totalorder %s23_s20, 4  ;;  %p769_p1 = scmp.ge.s32.totalorder %s959_s19, 1 }
   0x5   : > { %p204_p2 = scmp.lt.s32.totalorder %s959_s19, 9 }
   0x6   : > { %s1121_s20 = smov (%p24_p0, %s23_s20), 0  ;;  %s1123_s21 = smov (!%p24_p0, %s26_s21), %s955_s18 }
   0x7   : > { %p205_p3 = pnand %p769_p1, %p204_p2  ;;  %p28_p4 = scmp.ge.s32.totalorder %s1123_s21, 2 }
   0x8   : > { %p247_p5 = scmp.lt.s32.totalorder (!%p205_p3), %s947_s16, 1  ;;  %p252_p6 = scmp.lt.s32.totalorder (!%p205_p3), %s943_s15, 3 }
   0x9   : > { %s1125_s21 = smov (%p28_p4, %s1123_s21), 0  ;;  %208 = sbr.rel (%p205_p3) target bundleno = 748 (0x2ec), region = 36 }
   0xa   : > { %s961_s9 = smov (!%p205_p3), 124   ;;  %s962_s13 = smov (!%p205_p3), 4  }
   0xb   : > { %s963_s14 = smov (!%p205_p3), 120  }
   0xe   : > { %s1127_s16 = smov (!%p247_p5, %s947_s16), 1  ;;  %s1129_s15 = smov (!%p252_p6, %s943_s15), 3  ;;  %vm315_vm0 = vcmask 130048   ;;  %vm442_vm1 = vcmask 64512   ;;  %vm429_vm2 = vcmask 31744   ;;  %vm492_vm3 = vcmask 523264  }
   0xf   : > { %s829_s22 = sshll.u32 %s1127_s16, 5  ;;  %s830_s26 = sshll.u32 %s1129_s15, 3 }
  0x10   : > { %s251_s25 = scalar_lea.vmem %s1111_s0, %s829_s22  ;;  %s256_s29 = scalar_lea.vmem %s1112_s1, %s830_s26 }
  0x11   : > { %s259_s6 = scalar_lea.vmem %s1113_s2, %s1129_s15  ;;  %s1032_s7 = sadd.s32 %s830_s26, %s829_s22  ;;  %v836_v0 = vld [vmem:[%s256_s29] sm:$0xff]  ;;  %v833_v2 = vld [vmem:[%s251_s25 + $0x8] sm:$0xff]  ;;  %v834_v3 = vld [vmem:[%s251_s25 + $0x10] sm:$0xff] }
  0x12   : > { %v832_v1 = vld [vmem:[%s251_s25] sm:$0xff]  ;;  %335 = vmatpush.bf16.msra.mxu0 %v836_v0  ;;  %v835_v4 = vld [vmem:[%s251_s25 + $0x18] sm:$0xff]  ;;  %s831_s8 = sshll.u32 %s1129_s15, 5  ;;  %s778_s15 = sshll.u32 %s1032_s7, 3 }
  0x13   : > { %v888_v6 = vld [vmem:[%s259_s6] ss:$0 sm:$0xff]  ;;  %s264_s12 = scalar_lea.vmem %s1114_s3, %s831_s8  ;;  %s1078_s23 = scalar_lea.vmem %s1115_s4, %s778_s15 }
  0x14   : > { %v837_v17 = vld [vmem:[%s264_s12] sm:$0xff]  ;;  %v838_v27 = vld [vmem:[%s264_s12 + $0x8] sm:$0xff]  ;;  %v840_v34 = vld [vmem:[%s264_s12 + $0x18] sm:$0xff] }
  0x15   : > { %799 = vmatmul.msk.bf16.vlgmr.msra.gmra.mxu0 %vm315_vm0, %v832_v1  ;;  %v839_v38 = vld [vmem:[%s264_s12 + $0x10] sm:$0xff] }
  0x25   : > { %800 = vmatmul.msk.bf16.gmra.mxu0 %vm315_vm0, %v833_v2 }
  0x35   : > { %801 = vmatmul.msk.bf16.gmra.mxu0 %vm315_vm0, %v834_v3 }
  0x45   : > { %802 = vmatmul.msk.bf16.gmra.mxu0 %vm315_vm0, %v835_v4 }
  0x92   : > { %v337_v5 = vpop.f32.mrf.mxu0 }
  0x93   : > { %v338_v7 = vadd.f32 %v888_v6, %v337_v5 }
  0x95   : > { %v357_v9 = vpack.c.bf16 %v338_v7, %v338_v7 }
  0x97   : > { %v381_v12 = vunpack.c.l.b16 %v357_v9 }
  0x9a   : > { %v339_v8 = vpop.f32.mrf.mxu0 }
  0x9b   : > { %v340_v10 = vadd.f32 %v888_v6, %v339_v8 }
  0x9d   : > { %v358_v11 = vpack.c.bf16 %v340_v10, %v340_v10 }
  0x9f   : > { %v382_v13 = vunpack.c.l.b16 %v358_v11 }
  0xa1   : > { %v389_v14 = vpack.c.b16 %v382_v13, %v381_v12 }
  0xa2   : > { %v342_v15 = vpop.f32.mrf.mxu0 }
  0xa3   : > { %393 = vrot.lane.b32.xlu0 %v389_v14, %s961_s9  ;;  %v343_v16 = vadd.f32 %v888_v6, %v342_v15  ;;  %v452_v49 = vsel %vm442_vm1, %v389_v14, 0 }
  0xa5   : > { %v359_v19 = vpack.c.bf16 %v343_v16, %v343_v16 }
  0xa7   : > { %v383_v22 = vunpack.c.l.b16 %v359_v19 }
  0xaa   : > { %v344_v18 = vpop.f32.mrf.mxu0 }
  0xab   : > { %v345_v20 = vadd.f32 %v888_v6, %v344_v18  ;;  %421 = vrot.lane.b32.xlu0 %v837_v17, %s962_s13 }
  0xad   : > { %v360_v21 = vpack.c.bf16 %v345_v20, %v345_v20 }
  0xaf   : > { %v384_v23 = vunpack.c.l.b16 %v360_v21 }
  0xb1   : > { %v390_v24 = vpack.c.b16 %v384_v23, %v383_v22 }
  0xb2   : > { %v347_v25 = vpop.f32.mrf.mxu0 }
  0xb3   : > { %395 = vrot.lane.b32.xlu1 %v390_v24, %s961_s9  ;;  %v348_v26 = vadd.f32 %v888_v6, %v347_v25  ;;  %v455_v48 = vsel %vm442_vm1, %v390_v24, 0 }
  0xb5   : > { %v361_v28 = vpack.c.bf16 %v348_v26, %v348_v26 }
  0xb7   : > { %v385_v31 = vunpack.c.l.b16 %v361_v28 }
  0xba   : > { %v349_v29 = vpop.f32.mrf.mxu0 }
  0xbb   : > { %v350_v30 = vadd.f32 %v888_v6, %v349_v29  ;;  %423 = vrot.lane.b32.xlu1 %v838_v27, %s962_s13 }
  0xbd   : > { %v362_v32 = vpack.c.bf16 %v350_v30, %v350_v30 }
  0xbf   : > { %v386_v33 = vunpack.c.l.b16 %v362_v32 }
  0xc1   : > { %v391_v35 = vpack.c.b16 %v386_v33, %v385_v31 }
  0xc2   : > { %v352_v36 = vpop.f32.mrf.mxu0 }
  0xc3   : > { %397 = vrot.lane.b32.xlu2 %v391_v35, %s961_s9  ;;  %427 = vrot.lane.b32.xlu1 %v840_v34, %s962_s13  ;;  %v353_v37 = vadd.f32 %v888_v6, %v352_v36  ;;  %v458_v47 = vsel %vm442_vm1, %v391_v35, 0 }
  0xc5   : > { %v363_v39 = vpack.c.bf16 %v353_v37, %v353_v37 }
  0xc7   : > { %v387_v42 = vunpack.c.l.b16 %v363_v39 }
  0xca   : > { %v354_v40 = vpop.f32.mrf.mxu0 }
  0xcb   : > { %v355_v41 = vadd.f32 %v888_v6, %v354_v40  ;;  %425 = vrot.lane.b32.xlu2 %v839_v38, %s962_s13 }
  0xcd   : > { %v364_v43 = vpack.c.bf16 %v355_v41, %v355_v41 }
  0xcf   : > { %v388_v44 = vunpack.c.l.b16 %v364_v43 }
  0xd1   : > { %v392_v45 = vpack.c.b16 %v388_v44, %v387_v42 }
  0xd3   : > { %575 = vrot.lane.b32.xlu2 %v392_v45, %s963_s14  ;;  %399 = vrot.lane.b32.xlu0 %v392_v45, %s961_s9  ;;  %v461_v46 = vsel %vm442_vm1, %v392_v45, 0 }
  0xd4   : > { %467 = vmatpush.bf16.xpose.msra.mxu1 %v461_v46  ;;  %841 = vmatpush.bf16.xpose.msra.mxu3 %v461_v46 }
  0xdb   : > { %573 = vrot.lane.b32.xlu2 %v391_v35, %s963_s14 }
  0xdc   : > { %468 = vmatpush.bf16.xpose.msra.mxu1 %v458_v47  ;;  %842 = vmatpush.bf16.xpose.msra.mxu3 %v458_v47 }
  0xe3   : > { %571 = vrot.lane.b32.xlu2 %v390_v24, %s963_s14 }
  0xe4   : > { %469 = vmatpush.bf16.xpose.msra.mxu1 %v455_v48  ;;  %843 = vmatpush.bf16.xpose.msra.mxu3 %v455_v48 }
  0xeb   : > { %569 = vrot.lane.b32.xlu2 %v389_v14, %s963_s14 }
  0xec   : > { %470 = vmatpush.bf16.xpose.msra.mxu1 %v452_v49  ;;  %844 = vmatpush.bf16.xpose.msra.mxu3 %v452_v49 }
 0x115   : > { %v394_v50 = vpop.permute.xlu0 %393 }
 0x11d   : > { %v398_v51 = vpop.permute.xlu2 %397  ;;  %v422_v52 = vpop.permute.xlu0 %421 }
 0x11e   : > { %v432_v53 = vsel %vm429_vm2, %v394_v50, %v422_v52 }
 0x11f   : > { %819 = vmatmul.msk.bf16.vlgmr.msra.gmra.mxu1 %vm442_vm1, %v432_v53 }
 0x125   : > { %v426_v54 = vpop.permute.xlu2 %425  ;;  %v396_v55 = vpop.permute.xlu1 %395 }
 0x126   : > { %v438_v61 = vsel %vm429_vm2, %v398_v51, %v426_v54 }
 0x12d   : > { %v576_v56 = vpop.permute.xlu2 %575  ;;  %v424_v57 = vpop.permute.xlu1 %423 }
 0x12e   : > { %597 = vmatpush.bf16.msra.mxu2 %v576_v56  ;;  %v435_v58 = vsel %vm429_vm2, %v396_v55, %v424_v57 }
 0x12f   : > { %820 = vmatmul.msk.bf16.vlgmr.msra.gmra.mxu3 %vm442_vm1, %v435_v58 }
 0x135   : > { %v574_v59 = vpop.permute.xlu2 %573  ;;  %v428_v63 = vpop.permute.xlu1 %427 }
 0x136   : > { %598 = vmatpush.bf16.msra.mxu2 %v574_v59 }
 0x13d   : > { %v572_v60 = vpop.permute.xlu2 %571 }
 0x13e   : > { %599 = vmatpush.bf16.msra.mxu2 %v572_v60 }
 0x13f   : > { %821 = vmatmul.msk.bf16.gmra.mxu3 %vm442_vm1, %v438_v61 }
 0x145   : > { %v570_v62 = vpop.permute.xlu2 %569  ;;  %v400_v0 = vpop.permute.xlu0 %399 }
 0x146   : > { %600 = vmatpush.bf16.msra.mxu2 %v570_v62  ;;  %v441_v1 = vsel %vm429_vm2, %v400_v0, %v428_v63 }
 0x14f   : > { %822 = vmatmul.msk.bf16.gmra.mxu3 %vm442_vm1, %v441_v1 }
 0x19c   : > { %v472_v2 = vpop.f32.mrf.mxu1 }
 0x19d   : > { %v493_v3 = vsel %vm492_vm3, %v472_v2, -inf }
 0x19e   : > { %494 = vmax.xlane.f32.xlu0 %v493_v3 }
 0x1a4   : > { %v474_v4 = vpop.f32.mrf.mxu1 }
 0x1a5   : > { %v496_v5 = vsel %vm492_vm3, %v474_v4, -inf }
 0x1a6   : > { %497 = vmax.xlane.f32.xlu1 %v496_v5 }
 0x1b2   : > { %v477_v6 = vpop.f32.mrf.mxu3 }
 0x1b3   : > { %v499_v7 = vsel %vm492_vm3, %v477_v6, -inf }
 0x1b4   : > { %500 = vmax.xlane.f32.xlu2 %v499_v7 }
 0x1ba   : > { %v479_v8 = vpop.f32.mrf.mxu3 }
 0x1bb   : > { %v502_v9 = vsel %vm492_vm3, %v479_v8, -inf }
 0x1bc   : > { %503 = vmax.xlane.f32.xlu0 %v502_v9 }
 0x1c2   : > { %v482_v10 = vpop.f32.mrf.mxu3 }
 0x1c3   : > { %v505_v11 = vsel %vm492_vm3, %v482_v10, -inf }
 0x1c4   : > { %506 = vmax.xlane.f32.xlu1 %v505_v11 }
 0x1ca   : > { %v484_v12 = vpop.f32.mrf.mxu3 }
 0x1cb   : > { %v508_v13 = vsel %vm492_vm3, %v484_v12, -inf }
 0x1cc   : > { %509 = vmax.xlane.f32.xlu0 %v508_v13 }
 0x1d2   : > { %v487_v14 = vpop.f32.mrf.mxu3 }
 0x1d3   : > { %v511_v15 = vsel %vm492_vm3, %v487_v14, -inf }
 0x1d4   : > { %512 = vmax.xlane.f32.xlu1 %v511_v15 }
 0x1da   : > { %v489_v16 = vpop.f32.mrf.mxu3 }
 0x1db   : > { %v514_v17 = vsel %vm492_vm3, %v489_v16, -inf }
 0x1dc   : > { %515 = vmax.xlane.f32.xlu0 %v514_v17 }
 0x211   : > { %v495_v18 = vpop.xlane.xlu0 %494 }
 0x212   : > { %v517_v19 = vsub.f32 %v472_v2, %v495_v18 }
 0x214   : > { %v525_v20 = vmul.f32 1.442695, %v517_v19 }
 0x216   : > { %889 = vpow2.f32 %v525_v20 }
 0x219   : > { %v498_v21 = vpop.xlane.xlu1 %497 }
 0x21a   : > { %v518_v22 = vsub.f32 %v474_v4, %v498_v21 }
 0x21c   : > { %v890_v23 = vpop.eup %889  ;;  %v527_v24 = vmul.f32 1.442695, %v518_v22 }
 0x21d   : > { %v541_v25 = vsel %vm492_vm3, %v890_v23, 0.0 }
 0x21e   : > { %891 = vpow2.f32 %v527_v24  ;;  %542 = vadd.xlane.f32.xlu1 %v541_v25 }
 0x224   : > { %v892_v26 = vpop.eup %891 }
 0x225   : > { %v544_v27 = vsel %vm492_vm3, %v892_v26, 0.0  ;;  %v565_v28 = vpack.c.bf16 %v892_v26, %v890_v23 }
 0x226   : > { %545 = vadd.xlane.f32.xlu2 %v544_v27 }
 0x227   : > { %v501_v29 = vpop.xlane.xlu2 %500  ;;  %823 = vmatmul.msk.bf16.vlgmr.msra.gmra.mxu2 %vm492_vm3, %v565_v28 }
 0x228   : > { %v519_v30 = vsub.f32 %v477_v6, %v501_v29 }
 0x22a   : > { %v529_v31 = vmul.f32 1.442695, %v519_v30 }
 0x22c   : > { %893 = vpow2.f32 %v529_v31 }
 0x22f   : > { %v504_v32 = vpop.xlane.xlu0 %503 }
 0x230   : > { %v520_v33 = vsub.f32 %v479_v8, %v504_v32 }
 0x232   : > { %v894_v34 = vpop.eup %893  ;;  %v531_v35 = vmul.f32 1.442695, %v520_v33 }
 0x233   : > { %v547_v36 = vsel %vm492_vm3, %v894_v34, 0.0 }
 0x234   : > { %895 = vpow2.f32 %v531_v35  ;;  %548 = vadd.xlane.f32.xlu0 %v547_v36 }
 0x237   : > { %v507_v37 = vpop.xlane.xlu1 %506 }
 0x238   : > { %v521_v38 = vsub.f32 %v482_v10, %v507_v37 }
 0x23a   : > { %v896_v39 = vpop.eup %895  ;;  %v533_v40 = vmul.f32 1.442695, %v521_v38 }
 0x23b   : > { %v550_v41 = vsel %vm492_vm3, %v896_v39, 0.0  ;;  %v566_v42 = vpack.c.bf16 %v896_v39, %v894_v34 }
 0x23c   : > { %897 = vpow2.f32 %v533_v40  ;;  %551 = vadd.xlane.f32.xlu1 %v550_v41 }
 0x23d   : > { %824 = vmatmul.msk.bf16.gmra.mxu2 %vm492_vm3, %v566_v42 }
 0x23f   : > { %v510_v43 = vpop.xlane.xlu0 %509 }
 0x240   : > { %v522_v44 = vsub.f32 %v484_v12, %v510_v43 }
 0x242   : > { %v898_v45 = vpop.eup %897  ;;  %v535_v46 = vmul.f32 1.442695, %v522_v44 }
 0x243   : > { %v553_v47 = vsel %vm492_vm3, %v898_v45, 0.0 }
 0x244   : > { %899 = vpow2.f32 %v535_v46  ;;  %554 = vadd.xlane.f32.xlu2 %v553_v47 }
 0x247   : > { %v513_v48 = vpop.xlane.xlu1 %512 }
 0x248   : > { %v523_v49 = vsub.f32 %v487_v14, %v513_v48 }
 0x24a   : > { %v900_v50 = vpop.eup %899  ;;  %v537_v51 = vmul.f32 1.442695, %v523_v49 }
 0x24b   : > { %v556_v52 = vsel %vm492_vm3, %v900_v50, 0.0  ;;  %v567_v53 = vpack.c.bf16 %v900_v50, %v898_v45 }
 0x24c   : > { %901 = vpow2.f32 %v537_v51  ;;  %557 = vadd.xlane.f32.xlu0 %v556_v52 }
 0x24d   : > { %825 = vmatmul.msk.bf16.gmra.mxu2 %vm492_vm3, %v567_v53 }
 0x24f   : > { %v516_v54 = vpop.xlane.xlu0 %515 }
 0x250   : > { %v524_v55 = vsub.f32 %v489_v16, %v516_v54 }
 0x252   : > { %v902_v56 = vpop.eup %901  ;;  %v539_v57 = vmul.f32 1.442695, %v524_v55 }
 0x253   : > { %v559_v58 = vsel %vm492_vm3, %v902_v56, 0.0 }
 0x254   : > { %903 = vpow2.f32 %v539_v57  ;;  %560 = vadd.xlane.f32.xlu1 %v559_v58 }
 0x25a   : > { %v904_v59 = vpop.eup %903 }
 0x25b   : > { %v562_v60 = vsel %vm492_vm3, %v904_v59, 0.0  ;;  %v568_v61 = vpack.c.bf16 %v904_v59, %v902_v56 }
 0x25c   : > { %563 = vadd.xlane.f32.xlu2 %v562_v60 }
 0x25d   : > { %826 = vmatmul.msk.bf16.gmra.mxu2 %vm492_vm3, %v568_v61 }
 0x291   : > { %v543_v62 = vpop.xlane.xlu1 %542 }
 0x292   : > { %905 = vrcp.f32 %v543_v62 }
 0x298   : > { %v906_v0 = vpop.eup %905 }
 0x299   : > { %v546_v63 = vpop.xlane.xlu2 %545 }
 0x29a   : > { %907 = vrcp.f32 %v546_v63 }
 0x2a0   : > { %v908_v3 = vpop.eup %907 }
 0x2a7   : > { %v549_v6 = vpop.xlane.xlu0 %548 }
 0x2a8   : > { %909 = vrcp.f32 %v549_v6 }
 0x2aa   : > { %v602_v1 = vpop.f32.mrf.mxu2 }
 0x2ab   : > { %v630_v2 = vmul.f32 %v906_v0, %v602_v1 }
 0x2ad   : > { %638 = vst.msk [vmem:[%s1078_s23] sm:$0xff] %vm429_vm2, %v630_v2 }
 0x2ae   : > { %v910_v8 = vpop.eup %909 }
 0x2af   : > { %v552_v7 = vpop.xlane.xlu1 %551 }
 0x2b0   : > { %911 = vrcp.f32 %v552_v7 }
 0x2b2   : > { %v604_v4 = vpop.f32.mrf.mxu2 }
 0x2b3   : > { %v631_v5 = vmul.f32 %v908_v3, %v604_v4 }
 0x2b5   : > { %639 = vst.msk [vmem:[%s1078_s23 + $0x8] sm:$0xff] %vm429_vm2, %v631_v5 }
 0x2b6   : > { %v912_v12 = vpop.eup %911 }
 0x2b7   : > { %v555_v11 = vpop.xlane.xlu2 %554 }
 0x2b8   : > { %913 = vrcp.f32 %v555_v11 }
 0x2be   : > { %v914_v16 = vpop.eup %913 }
 0x2bf   : > { %v558_v15 = vpop.xlane.xlu0 %557 }
 0x2c0   : > { %v607_v9 = vpop.f32.mrf.mxu2  ;;  %915 = vrcp.f32 %v558_v15 }
 0x2c1   : > { %v632_v10 = vmul.f32 %v910_v8, %v607_v9 }
 0x2c3   : > { %640 = vst.msk [vmem:[%s1078_s23 + $0x10] sm:$0xff] %vm429_vm2, %v632_v10 }
 0x2c6   : > { %v916_v20 = vpop.eup %915 }
 0x2c7   : > { %v561_v19 = vpop.xlane.xlu1 %560 }
 0x2c8   : > { %v609_v13 = vpop.f32.mrf.mxu2  ;;  %917 = vrcp.f32 %v561_v19 }
 0x2c9   : > { %v633_v14 = vmul.f32 %v912_v12, %v609_v13 }
 0x2cb   : > { %641 = vst.msk [vmem:[%s1078_s23 + $0x18] sm:$0xff] %vm429_vm2, %v633_v14 }
 0x2ce   : > { %v918_v24 = vpop.eup %917 }
 0x2cf   : > { %v564_v23 = vpop.xlane.xlu2 %563 }
 0x2d0   : > { %v612_v17 = vpop.f32.mrf.mxu2  ;;  %919 = vrcp.f32 %v564_v23 }
 0x2d1   : > { %v634_v18 = vmul.f32 %v914_v16, %v612_v17 }
 0x2d3   : > { %642 = vst.msk [vmem:[%s1078_s23 + $0x20] sm:$0xff] %vm429_vm2, %v634_v18 }
 0x2d6   : > { %v920_v27 = vpop.eup %919 }
 0x2d8   : > { %v614_v21 = vpop.f32.mrf.mxu2 }
 0x2d9   : > { %v635_v22 = vmul.f32 %v916_v20, %v614_v21 }
 0x2db   : > { %643 = vst.msk [vmem:[%s1078_s23 + $0x28] sm:$0xff] %vm429_vm2, %v635_v22 }
 0x2e0   : > { %v617_v25 = vpop.f32.mrf.mxu2 }
 0x2e1   : > { %v636_v26 = vmul.f32 %v918_v24, %v617_v25 }
 0x2e3   : > { %644 = vst.msk [vmem:[%s1078_s23 + $0x30] sm:$0xff] %vm429_vm2, %v636_v26 }
 0x2e8   : > { %v619_v28 = vpop.f32.mrf.mxu2 }
 0x2e9   : > { %v637_v29 = vmul.f32 %v920_v27, %v619_v28 }
 0x2eb   : > { %645 = vst.msk [vmem:[%s1078_s23 + $0x38] sm:$0xff] %vm429_vm2, %v637_v29 }
 0x2ec PF: > { %s14_s19 = sadd.s32 1, %s959_s19   ;;  %s1116_s15 = smov %s951_s17 }
 0x2ed   : > { %p11_p7 = scmp.ge.s32.totalorder %s14_s19, 10   ;;  %s1117_s16 = smov %s955_s18 }
 0x2ee   : > { %s1118_s17 = smov %s1121_s20  ;;  %s1119_s18 = smov %s1125_s21 }
 0x2ef   :  { %13 = sbr.rel (!%p11_p7) target bundleno = 3 (0x3), region = 75 }

</bundles_post_ra>
